<compile_context>
chip_gen: v7x
topology: tpu7x:2x2x1
jax: 0.10.0
libtpu: 0.0.40
codegen_flags: <defaults>
</compile_context>

<pallas_src>
import jax
import jax.numpy as jnp
from jax import lax
from jax.experimental import pallas as pl
from jax.experimental.pallas import tpu as pltpu

_LANE = 128                       # lane width (last dim)
_SUBLANE = 8                      # f32 sublane count (second-to-last dim)
_TABLE_VMEM_BUDGET = 4 * 1024 * 1024   # conservative across v5e / v6e / v7x


def _round_up(x, m):
    return (x + m - 1) // m * m


def _contrastive_kernel(offs_ref, toks_ref, table_ref, *rest):
    """One bag-tile per grid step: pooled EmbeddingBag(mean) + optional head.

    Ref order: [offsets_ext, tok_ids] (SMEM scalar prefetch), table (VMEM f32),
    optionally w1,b1,w2,b2 (VMEM), then out, h_scratch.
    """
    with_head = len(rest) == 6
    if with_head:
        w1_ref, b1_ref, w2_ref, b2_ref, out_ref, h_ref = rest
    else:
        out_ref, h_ref = rest

    tile = pl.program_id(0)
    TB, Dp = h_ref.shape
    zero_row = jnp.zeros((1, Dp), jnp.float32)          # hoisted out of the loop

    # ---- EmbeddingBag(mode='mean'): VMEM row gather + per-bag sum ----------
    for bt in range(TB):                                 # static bags-in-tile loop
        bag = tile * TB + bt
        start = offs_ref[bag]                            # SMEM scalar reads;
        end = offs_ref[bag + 1]                          # exact counts from offsets

        def body(s, acc):
            t = toks_ref[s]                              # token id (SMEM)
            return acc + table_ref[pl.ds(t, 1), :]       # dynamic row load (1, Dp)

        bag_sum = lax.fori_loop(start, end, body, zero_row)
        cnt = (end - start).astype(jnp.float32)
        inv = 1.0 / jnp.maximum(cnt, 1.0)                # empty bag -> sum==0 -> row 0
        h_ref[pl.ds(bt, 1), :] = bag_sum * inv           # static row store

    if not with_head:                                    # g = Identity
        out_ref[...] = h_ref[...]
        return

    # ---- projection head: Linear -> ReLU -> Linear (bf16 x bf16, f32 acc) --
    h = h_ref[...].astype(jnp.bfloat16)
    z1 = jnp.dot(h, w1_ref[...], preferred_element_type=jnp.float32) + b1_ref[...]
    z1 = jnp.maximum(z1, 0.0).astype(jnp.bfloat16)
    out_ref[...] = (jnp.dot(z1, w2_ref[...], preferred_element_type=jnp.float32)
                    + b2_ref[...])


def contrastive_forward(inputs, offsets, table, w1=None, b1=None, w2=None,
                        b2=None, *, with_projection_head=True,
                        bag_tile=_SUBLANE):
    """inputs: (S,) token ids; offsets: (B,) sorted bag start positions."""
    S = int(inputs.shape[0])
    B = int(offsets.shape[0])
    V, D = table.shape
    Dp = _round_up(D, _LANE)
    # TODO(synk): raise bag_tile to >=256 once B is large so the v6e/v7x
    # 2x256x256 MXU is filled by the projection-head matmuls.
    TB = max(_SUBLANE, int(bag_tile))
    Bp = _round_up(max(B, 1), TB)
    n_tiles = Bp // TB

    # VMEM-resident table fast path (f32 rows, lane-padded).
    table_bytes = V * Dp * 4
    if table_bytes > _TABLE_VMEM_BUDGET:
        # TODO(synk): HBM table + chunked multi-buffered DMA gather path.
        raise NotImplementedError(
            "embedding table too large for the VMEM-resident fast path")
    table_p = jnp.pad(table.astype(jnp.float32), ((0, 0), (0, Dp - D)))

    # torch.nn.EmbeddingBag semantics: bag b spans [offsets[b], offsets[b+1]),
    # last bag runs to S.  Padded bags get start == end == S (empty -> zeros).
    offsets = offsets.astype(jnp.int32)
    offs_ext = jnp.concatenate([offsets, jnp.full((Bp + 1 - B,), S, jnp.int32)])
    # Clamp ids so a bad token can never read out of bounds (VMEM has no check).
    tok_ids = jnp.clip(inputs.astype(jnp.int32), 0, V - 1)
    if S == 0:                                  # keep SMEM array non-empty; never read
        tok_ids = jnp.zeros((1,), jnp.int32)

    operands = [offs_ext, tok_ids, table_p]
    in_specs = [pl.BlockSpec((V, Dp), lambda i, *_: (0, 0))]
    vmem_need = table_bytes

    if with_projection_head:
        H1 = w1.shape[1]
        H = w2.shape[1]
        H1p = _round_up(H1, _LANE)
        Hp = _round_up(H, _LANE)
        w1_p = jnp.pad(w1, ((0, Dp - D), (0, H1p - H1))).astype(jnp.bfloat16)
        b1_p = jnp.pad(b1, (0, H1p - H1)).reshape(1, H1p).astype(jnp.float32)
        w2_p = jnp.pad(w2, ((0, H1p - H1), (0, Hp - H))).astype(jnp.bfloat16)
        b2_p = jnp.pad(b2, (0, Hp - H)).reshape(1, Hp).astype(jnp.float32)
        operands += [w1_p, b1_p, w2_p, b2_p]
        in_specs += [
            pl.BlockSpec((Dp, H1p), lambda i, *_: (0, 0)),
            pl.BlockSpec((1, H1p), lambda i, *_: (0, 0)),
            pl.BlockSpec((H1p, Hp), lambda i, *_: (0, 0)),
            pl.BlockSpec((1, Hp), lambda i, *_: (0, 0)),
        ]
        vmem_need += (w1_p.size * 2 + 8 * H1p * 4 + w2_p.size * 2 + 8 * Hp * 4)
        out_cols, keep_cols = Hp, H
    else:
        out_cols, keep_cols = Dp, D

    vmem_need += 2 * TB * out_cols * 4 + TB * Dp * 4      # out (dbl-buf) + scratch
    vmem_limit = int(min(max(2 * vmem_need + (1 << 20), 16 << 20), 32 << 20))

    grid_spec = pltpu.PrefetchScalarGridSpec(
        num_scalar_prefetch=2,                 # offsets_ext, tok_ids -> SMEM
        grid=(n_tiles,),
        in_specs=in_specs,
        out_specs=pl.BlockSpec((TB, out_cols), lambda i, *_: (i, 0)),
        scratch_shapes=[pltpu.VMEM((TB, Dp), jnp.float32)],
    )

    out = pl.pallas_call(
        _contrastive_kernel,
        out_shape=jax.ShapeDtypeStruct((Bp, out_cols), jnp.float32),
        grid_spec=grid_spec,
        compiler_params=pltpu.CompilerParams(
            dimension_semantics=("parallel",),   # bag-tile axis -> both v7x TCs
            vmem_limit_bytes=vmem_limit,
        ),
    )(*operands)

    return out[:B, :keep_cols]


def reference_forward(inputs, offsets, table, w1=None, b1=None, w2=None,
                      b2=None, *, with_projection_head=True):
    """Pure-JAX reference mirroring torch EmbeddingBag(mode='mean') + head."""
    S = inputs.shape[0]
    emb = table[inputs]                                          # (S, D)
    starts = offsets
    ends = jnp.concatenate([offsets[1:], jnp.array([S], jnp.int32)])
    pos = jnp.arange(S)[None, :]
    mask = ((pos >= starts[:, None]) & (pos < ends[:, None])).astype(jnp.float32)
    counts = jnp.maximum(mask.sum(axis=1, keepdims=True), 1.0)
    h = (mask @ emb) / counts                                    # (B, D)
    if not with_projection_head:
        return h
    z1 = jnp.maximum(h @ w1 + b1, 0.0)
    return z1 @ w2 + b2


if __name__ == "__main__":
    # Small, deterministic configuration.
    num_embeddings = 32        # vocab size
    embedding_dim = 16
    num_last_hidden_units = 32
    seq_len = 16               # total number of tokens across all bags
    num_bags = 4

    key = jax.random.PRNGKey(0)
    k_tab, k_w1, k_b1, k_w2, k_b2, k_in = jax.random.split(key, 6)

    table = jax.random.normal(k_tab, (num_embeddings, embedding_dim), jnp.float32)
    w1 = jax.random.uniform(k_w1, (embedding_dim, num_last_hidden_units),
                            jnp.float32, -0.1, 0.1)
    b1 = jax.random.uniform(k_b1, (num_last_hidden_units,), jnp.float32, -0.1, 0.1)
    w2 = jax.random.uniform(k_w2, (num_last_hidden_units, num_last_hidden_units),
                            jnp.float32, -0.1, 0.1)
    b2 = jax.random.uniform(k_b2, (num_last_hidden_units,), jnp.float32, -0.1, 0.1)

    inputs = jax.random.randint(k_in, (seq_len,), 0, num_embeddings, jnp.int32)
    offsets = jnp.array([0, 3, 7, 12], jnp.int32)   # bag start positions

    # with_projection_head=True (module default)
    z = contrastive_forward(inputs, offsets, table, w1, b1, w2, b2,
                            with_projection_head=True)
    z = jax.block_until_ready(z)

    # with_projection_head=False (g = Identity)
    h = contrastive_forward(inputs, offsets, table, with_projection_head=False)
    h = jax.block_until_ready(h)

    # The kernel keeps the table in f32; only the head weights are bf16.
    w1_q = w1.astype(jnp.bfloat16).astype(jnp.float32)
    w2_q = w2.astype(jnp.bfloat16).astype(jnp.float32)
    z_ref = reference_forward(inputs, offsets, table, w1_q, b1, w2_q, b2,
                              with_projection_head=True)
    h_ref = reference_forward(inputs, offsets, table, with_projection_head=False)

    assert z.shape == (num_bags, num_last_hidden_units)
    assert h.shape == (num_bags, embedding_dim)
    assert jnp.allclose(z, z_ref, atol=5e-2, rtol=5e-2), (
        float(jnp.max(jnp.abs(z - z_ref))))
    assert jnp.allclose(h, h_ref, atol=5e-2, rtol=5e-2), (
        float(jnp.max(jnp.abs(h - h_ref))))

    print("KERNEL_OK")
</pallas_src>

<mosaic_0001>
module attributes {stable_mosaic.version = 11 : i64} {
  func.func @_contrastive_kernel(%arg0: i32, %arg1: memref<9xi32, #tpu.memory_space<smem>>, %arg2: memref<16xi32, #tpu.memory_space<smem>>, %arg3: memref<32x128xf32, #tpu.memory_space<vmem>>, %arg4: memref<128x128xbf16, #tpu.memory_space<vmem>>, %arg5: memref<1x128xf32, #tpu.memory_space<vmem>>, %arg6: memref<128x128xbf16, #tpu.memory_space<vmem>>, %arg7: memref<1x128xf32, #tpu.memory_space<vmem>>, %arg8: memref<8x128xf32, #tpu.memory_space<vmem>>, %arg9: memref<8x128xf32, #tpu.memory_space<vmem>>) attributes {dimension_semantics = [#tpu.dimension_semantics<parallel>], iteration_bounds = array<i64: 1>, scalar_prefetch = 2 : i64, scratch_operands = 1 : i64, tpu.core_type = #tpu.core_type<tc>, window_params = [{pipeline_mode = #tpu.pipeline_mode<synchronous>, transform_indices = @transform_0, window_bounds = array<i64: 32, 128>}, {pipeline_mode = #tpu.pipeline_mode<synchronous>, transform_indices = @transform_1, window_bounds = array<i64: 128, 128>}, {pipeline_mode = #tpu.pipeline_mode<synchronous>, transform_indices = @transform_2, window_bounds = array<i64: 1, 128>}, {pipeline_mode = #tpu.pipeline_mode<synchronous>, transform_indices = @transform_3, window_bounds = array<i64: 128, 128>}, {pipeline_mode = #tpu.pipeline_mode<synchronous>, transform_indices = @transform_4, window_bounds = array<i64: 1, 128>}, {transform_indices = @transform_5, window_bounds = array<i64: 8, 128>}]} {
    %cst = arith.constant 0.000000e+00 : f32
    %0 = vector.broadcast %cst : f32 to vector<1x128xf32>
    %c8_i32 = arith.constant 8 : i32
    %1 = arith.muli %arg0, %c8_i32 : i32
    %c0_i32 = arith.constant 0 : i32
    %2 = arith.addi %1, %c0_i32 : i32
    %3 = arith.index_cast %2 : i32 to index
    %4 = memref.load %arg1[%3] : memref<9xi32, #tpu.memory_space<smem>>
    %c1_i32 = arith.constant 1 : i32
    %5 = arith.addi %2, %c1_i32 : i32
    %6 = arith.index_cast %5 : i32 to index
    %7 = memref.load %arg1[%6] : memref<9xi32, #tpu.memory_space<smem>>
    %8 = arith.subi %7, %4 : i32
    %9 = arith.addi %4, %8 : i32
    %c1_i32_0 = arith.constant 1 : i32
    %10 = scf.for %arg10 = %4 to %9 step %c1_i32_0 iter_args(%arg11 = %0) -> (vector<1x128xf32>)  : i32 {
      %153 = arith.index_cast %arg10 : i32 to index
      %154 = memref.load %arg2[%153] : memref<16xi32, #tpu.memory_space<smem>>
      %155 = arith.index_cast %154 : i32 to index
      %c0_62 = arith.constant 0 : index
      %156 = vector.load %arg3[%155, %c0_62] : memref<32x128xf32, #tpu.memory_space<vmem>>, vector<1x128xf32>
      %157 = arith.addf %arg11, %156 : vector<1x128xf32>
      scf.yield %157 : vector<1x128xf32>
    }
    %11 = arith.subi %7, %4 : i32
    %12 = arith.sitofp %11 : i32 to f32
    %cst_1 = arith.constant 1.000000e+00 : f32
    %13 = arith.maximumf %12, %cst_1 : f32
    %cst_2 = arith.constant 1.000000e+00 : f32
    %14 = arith.divf %cst_2, %13 : f32
    %15 = vector.broadcast %14 : f32 to vector<1x128xf32>
    %16 = arith.mulf %10, %15 : vector<1x128xf32>
    %c0 = arith.constant 0 : index
    %c0_3 = arith.constant 0 : index
    %17 = vector.load %arg9[%c0, %c0_3] : memref<8x128xf32, #tpu.memory_space<vmem>>, vector<1x128xf32>
    tpu.vector_store %arg9[%c0, %c0_3], %16 {strides = array<i32>} : memref<8x128xf32, #tpu.memory_space<vmem>>, vector<1x128xf32>,
    %c8_i32_4 = arith.constant 8 : i32
    %18 = arith.muli %arg0, %c8_i32_4 : i32
    %c1_i32_5 = arith.constant 1 : i32
    %19 = arith.addi %18, %c1_i32_5 : i32
    %20 = arith.index_cast %19 : i32 to index
    %21 = memref.load %arg1[%20] : memref<9xi32, #tpu.memory_space<smem>>
    %c1_i32_6 = arith.constant 1 : i32
    %22 = arith.addi %19, %c1_i32_6 : i32
    %23 = arith.index_cast %22 : i32 to index
    %24 = memref.load %arg1[%23] : memref<9xi32, #tpu.memory_space<smem>>
    %25 = arith.subi %24, %21 : i32
    %26 = arith.addi %21, %25 : i32
    %c1_i32_7 = arith.constant 1 : i32
    %27 = scf.for %arg10 = %21 to %26 step %c1_i32_7 iter_args(%arg11 = %0) -> (vector<1x128xf32>)  : i32 {
      %153 = arith.index_cast %arg10 : i32 to index
      %154 = memref.load %arg2[%153] : memref<16xi32, #tpu.memory_space<smem>>
      %155 = arith.index_cast %154 : i32 to index
      %c0_62 = arith.constant 0 : index
      %156 = vector.load %arg3[%155, %c0_62] : memref<32x128xf32, #tpu.memory_space<vmem>>, vector<1x128xf32>
      %157 = arith.addf %arg11, %156 : vector<1x128xf32>
      scf.yield %157 : vector<1x128xf32>
    }
    %28 = arith.subi %24, %21 : i32
    %29 = arith.sitofp %28 : i32 to f32
    %cst_8 = arith.constant 1.000000e+00 : f32
    %30 = arith.maximumf %29, %cst_8 : f32
    %cst_9 = arith.constant 1.000000e+00 : f32
    %31 = arith.divf %cst_9, %30 : f32
    %32 = vector.broadcast %31 : f32 to vector<1x128xf32>
    %33 = arith.mulf %27, %32 : vector<1x128xf32>
    %c1 = arith.constant 1 : index
    %c0_10 = arith.constant 0 : index
    %34 = vector.load %arg9[%c1, %c0_10] : memref<8x128xf32, #tpu.memory_space<vmem>>, vector<1x128xf32>
    tpu.vector_store %arg9[%c1, %c0_10], %33 {strides = array<i32>} : memref<8x128xf32, #tpu.memory_space<vmem>>, vector<1x128xf32>,
    %c8_i32_11 = arith.constant 8 : i32
    %35 = arith.muli %arg0, %c8_i32_11 : i32
    %c2_i32 = arith.constant 2 : i32
    %36 = arith.addi %35, %c2_i32 : i32
    %37 = arith.index_cast %36 : i32 to index
    %38 = memref.load %arg1[%37] : memref<9xi32, #tpu.memory_space<smem>>
    %c1_i32_12 = arith.constant 1 : i32
    %39 = arith.addi %36, %c1_i32_12 : i32
    %40 = arith.index_cast %39 : i32 to index
    %41 = memref.load %arg1[%40] : memref<9xi32, #tpu.memory_space<smem>>
    %42 = arith.subi %41, %38 : i32
    %43 = arith.addi %38, %42 : i32
    %c1_i32_13 = arith.constant 1 : i32
    %44 = scf.for %arg10 = %38 to %43 step %c1_i32_13 iter_args(%arg11 = %0) -> (vector<1x128xf32>)  : i32 {
      %153 = arith.index_cast %arg10 : i32 to index
      %154 = memref.load %arg2[%153] : memref<16xi32, #tpu.memory_space<smem>>
      %155 = arith.index_cast %154 : i32 to index
      %c0_62 = arith.constant 0 : index
      %156 = vector.load %arg3[%155, %c0_62] : memref<32x128xf32, #tpu.memory_space<vmem>>, vector<1x128xf32>
      %157 = arith.addf %arg11, %156 : vector<1x128xf32>
      scf.yield %157 : vector<1x128xf32>
    }
    %45 = arith.subi %41, %38 : i32
    %46 = arith.sitofp %45 : i32 to f32
    %cst_14 = arith.constant 1.000000e+00 : f32
    %47 = arith.maximumf %46, %cst_14 : f32
    %cst_15 = arith.constant 1.000000e+00 : f32
    %48 = arith.divf %cst_15, %47 : f32
    %49 = vector.broadcast %48 : f32 to vector<1x128xf32>
    %50 = arith.mulf %44, %49 : vector<1x128xf32>
    %c2 = arith.constant 2 : index
    %c0_16 = arith.constant 0 : index
    %51 = vector.load %arg9[%c2, %c0_16] : memref<8x128xf32, #tpu.memory_space<vmem>>, vector<1x128xf32>
    tpu.vector_store %arg9[%c2, %c0_16], %50 {strides = array<i32>} : memref<8x128xf32, #tpu.memory_space<vmem>>, vector<1x128xf32>,
    %c8_i32_17 = arith.constant 8 : i32
    %52 = arith.muli %arg0, %c8_i32_17 : i32
    %c3_i32 = arith.constant 3 : i32
    %53 = arith.addi %52, %c3_i32 : i32
    %54 = arith.index_cast %53 : i32 to index
    %55 = memref.load %arg1[%54] : memref<9xi32, #tpu.memory_space<smem>>
    %c1_i32_18 = arith.constant 1 : i32
    %56 = arith.addi %53, %c1_i32_18 : i32
    %57 = arith.index_cast %56 : i32 to index
    %58 = memref.load %arg1[%57] : memref<9xi32, #tpu.memory_space<smem>>
    %59 = arith.subi %58, %55 : i32
    %60 = arith.addi %55, %59 : i32
    %c1_i32_19 = arith.constant 1 : i32
    %61 = scf.for %arg10 = %55 to %60 step %c1_i32_19 iter_args(%arg11 = %0) -> (vector<1x128xf32>)  : i32 {
      %153 = arith.index_cast %arg10 : i32 to index
      %154 = memref.load %arg2[%153] : memref<16xi32, #tpu.memory_space<smem>>
      %155 = arith.index_cast %154 : i32 to index
      %c0_62 = arith.constant 0 : index
      %156 = vector.load %arg3[%155, %c0_62] : memref<32x128xf32, #tpu.memory_space<vmem>>, vector<1x128xf32>
      %157 = arith.addf %arg11, %156 : vector<1x128xf32>
      scf.yield %157 : vector<1x128xf32>
    }
    %62 = arith.subi %58, %55 : i32
    %63 = arith.sitofp %62 : i32 to f32
    %cst_20 = arith.constant 1.000000e+00 : f32
    %64 = arith.maximumf %63, %cst_20 : f32
    %cst_21 = arith.constant 1.000000e+00 : f32
    %65 = arith.divf %cst_21, %64 : f32
    %66 = vector.broadcast %65 : f32 to vector<1x128xf32>
    %67 = arith.mulf %61, %66 : vector<1x128xf32>
    %c3 = arith.constant 3 : index
    %c0_22 = arith.constant 0 : index
    %68 = vector.load %arg9[%c3, %c0_22] : memref<8x128xf32, #tpu.memory_space<vmem>>, vector<1x128xf32>
    tpu.vector_store %arg9[%c3, %c0_22], %67 {strides = array<i32>} : memref<8x128xf32, #tpu.memory_space<vmem>>, vector<1x128xf32>,
    %c8_i32_23 = arith.constant 8 : i32
    %69 = arith.muli %arg0, %c8_i32_23 : i32
    %c4_i32 = arith.constant 4 : i32
    %70 = arith.addi %69, %c4_i32 : i32
    %71 = arith.index_cast %70 : i32 to index
    %72 = memref.load %arg1[%71] : memref<9xi32, #tpu.memory_space<smem>>
    %c1_i32_24 = arith.constant 1 : i32
    %73 = arith.addi %70, %c1_i32_24 : i32
    %74 = arith.index_cast %73 : i32 to index
    %75 = memref.load %arg1[%74] : memref<9xi32, #tpu.memory_space<smem>>
    %76 = arith.subi %75, %72 : i32
    %77 = arith.addi %72, %76 : i32
    %c1_i32_25 = arith.constant 1 : i32
    %78 = scf.for %arg10 = %72 to %77 step %c1_i32_25 iter_args(%arg11 = %0) -> (vector<1x128xf32>)  : i32 {
      %153 = arith.index_cast %arg10 : i32 to index
      %154 = memref.load %arg2[%153] : memref<16xi32, #tpu.memory_space<smem>>
      %155 = arith.index_cast %154 : i32 to index
      %c0_62 = arith.constant 0 : index
      %156 = vector.load %arg3[%155, %c0_62] : memref<32x128xf32, #tpu.memory_space<vmem>>, vector<1x128xf32>
      %157 = arith.addf %arg11, %156 : vector<1x128xf32>
      scf.yield %157 : vector<1x128xf32>
    }
    %79 = arith.subi %75, %72 : i32
    %80 = arith.sitofp %79 : i32 to f32
    %cst_26 = arith.constant 1.000000e+00 : f32
    %81 = arith.maximumf %80, %cst_26 : f32
    %cst_27 = arith.constant 1.000000e+00 : f32
    %82 = arith.divf %cst_27, %81 : f32
    %83 = vector.broadcast %82 : f32 to vector<1x128xf32>
    %84 = arith.mulf %78, %83 : vector<1x128xf32>
    %c4 = arith.constant 4 : index
    %c0_28 = arith.constant 0 : index
    %85 = vector.load %arg9[%c4, %c0_28] : memref<8x128xf32, #tpu.memory_space<vmem>>, vector<1x128xf32>
    tpu.vector_store %arg9[%c4, %c0_28], %84 {strides = array<i32>} : memref<8x128xf32, #tpu.memory_space<vmem>>, vector<1x128xf32>,
    %c8_i32_29 = arith.constant 8 : i32
    %86 = arith.muli %arg0, %c8_i32_29 : i32
    %c5_i32 = arith.constant 5 : i32
    %87 = arith.addi %86, %c5_i32 : i32
    %88 = arith.index_cast %87 : i32 to index
    %89 = memref.load %arg1[%88] : memref<9xi32, #tpu.memory_space<smem>>
    %c1_i32_30 = arith.constant 1 : i32
    %90 = arith.addi %87, %c1_i32_30 : i32
    %91 = arith.index_cast %90 : i32 to index
    %92 = memref.load %arg1[%91] : memref<9xi32, #tpu.memory_space<smem>>
    %93 = arith.subi %92, %89 : i32
    %94 = arith.addi %89, %93 : i32
    %c1_i32_31 = arith.constant 1 : i32
    %95 = scf.for %arg10 = %89 to %94 step %c1_i32_31 iter_args(%arg11 = %0) -> (vector<1x128xf32>)  : i32 {
      %153 = arith.index_cast %arg10 : i32 to index
      %154 = memref.load %arg2[%153] : memref<16xi32, #tpu.memory_space<smem>>
      %155 = arith.index_cast %154 : i32 to index
      %c0_62 = arith.constant 0 : index
      %156 = vector.load %arg3[%155, %c0_62] : memref<32x128xf32, #tpu.memory_space<vmem>>, vector<1x128xf32>
      %157 = arith.addf %arg11, %156 : vector<1x128xf32>
      scf.yield %157 : vector<1x128xf32>
    }
    %96 = arith.subi %92, %89 : i32
    %97 = arith.sitofp %96 : i32 to f32
    %cst_32 = arith.constant 1.000000e+00 : f32
    %98 = arith.maximumf %97, %cst_32 : f32
    %cst_33 = arith.constant 1.000000e+00 : f32
    %99 = arith.divf %cst_33, %98 : f32
    %100 = vector.broadcast %99 : f32 to vector<1x128xf32>
    %101 = arith.mulf %95, %100 : vector<1x128xf32>
    %c5 = arith.constant 5 : index
    %c0_34 = arith.constant 0 : index
    %102 = vector.load %arg9[%c5, %c0_34] : memref<8x128xf32, #tpu.memory_space<vmem>>, vector<1x128xf32>
    tpu.vector_store %arg9[%c5, %c0_34], %101 {strides = array<i32>} : memref<8x128xf32, #tpu.memory_space<vmem>>, vector<1x128xf32>,
    %c8_i32_35 = arith.constant 8 : i32
    %103 = arith.muli %arg0, %c8_i32_35 : i32
    %c6_i32 = arith.constant 6 : i32
    %104 = arith.addi %103, %c6_i32 : i32
    %105 = arith.index_cast %104 : i32 to index
    %106 = memref.load %arg1[%105] : memref<9xi32, #tpu.memory_space<smem>>
    %c1_i32_36 = arith.constant 1 : i32
    %107 = arith.addi %104, %c1_i32_36 : i32
    %108 = arith.index_cast %107 : i32 to index
    %109 = memref.load %arg1[%108] : memref<9xi32, #tpu.memory_space<smem>>
    %110 = arith.subi %109, %106 : i32
    %111 = arith.addi %106, %110 : i32
    %c1_i32_37 = arith.constant 1 : i32
    %112 = scf.for %arg10 = %106 to %111 step %c1_i32_37 iter_args(%arg11 = %0) -> (vector<1x128xf32>)  : i32 {
      %153 = arith.index_cast %arg10 : i32 to index
      %154 = memref.load %arg2[%153] : memref<16xi32, #tpu.memory_space<smem>>
      %155 = arith.index_cast %154 : i32 to index
      %c0_62 = arith.constant 0 : index
      %156 = vector.load %arg3[%155, %c0_62] : memref<32x128xf32, #tpu.memory_space<vmem>>, vector<1x128xf32>
      %157 = arith.addf %arg11, %156 : vector<1x128xf32>
      scf.yield %157 : vector<1x128xf32>
    }
    %113 = arith.subi %109, %106 : i32
    %114 = arith.sitofp %113 : i32 to f32
    %cst_38 = arith.constant 1.000000e+00 : f32
    %115 = arith.maximumf %114, %cst_38 : f32
    %cst_39 = arith.constant 1.000000e+00 : f32
    %116 = arith.divf %cst_39, %115 : f32
    %117 = vector.broadcast %116 : f32 to vector<1x128xf32>
    %118 = arith.mulf %112, %117 : vector<1x128xf32>
    %c6 = arith.constant 6 : index
    %c0_40 = arith.constant 0 : index
    %119 = vector.load %arg9[%c6, %c0_40] : memref<8x128xf32, #tpu.memory_space<vmem>>, vector<1x128xf32>
    tpu.vector_store %arg9[%c6, %c0_40], %118 {strides = array<i32>} : memref<8x128xf32, #tpu.memory_space<vmem>>, vector<1x128xf32>,
    %c8_i32_41 = arith.constant 8 : i32
    %120 = arith.muli %arg0, %c8_i32_41 : i32
    %c7_i32 = arith.constant 7 : i32
    %121 = arith.addi %120, %c7_i32 : i32
    %122 = arith.index_cast %121 : i32 to index
    %123 = memref.load %arg1[%122] : memref<9xi32, #tpu.memory_space<smem>>
    %c1_i32_42 = arith.constant 1 : i32
    %124 = arith.addi %121, %c1_i32_42 : i32
    %125 = arith.index_cast %124 : i32 to index
    %126 = memref.load %arg1[%125] : memref<9xi32, #tpu.memory_space<smem>>
    %127 = arith.subi %126, %123 : i32
    %128 = arith.addi %123, %127 : i32
    %c1_i32_43 = arith.constant 1 : i32
    %129 = scf.for %arg10 = %123 to %128 step %c1_i32_43 iter_args(%arg11 = %0) -> (vector<1x128xf32>)  : i32 {
      %153 = arith.index_cast %arg10 : i32 to index
      %154 = memref.load %arg2[%153] : memref<16xi32, #tpu.memory_space<smem>>
      %155 = arith.index_cast %154 : i32 to index
      %c0_62 = arith.constant 0 : index
      %156 = vector.load %arg3[%155, %c0_62] : memref<32x128xf32, #tpu.memory_space<vmem>>, vector<1x128xf32>
      %157 = arith.addf %arg11, %156 : vector<1x128xf32>
      scf.yield %157 : vector<1x128xf32>
    }
    %130 = arith.subi %126, %123 : i32
    %131 = arith.sitofp %130 : i32 to f32
    %cst_44 = arith.constant 1.000000e+00 : f32
    %132 = arith.maximumf %131, %cst_44 : f32
    %cst_45 = arith.constant 1.000000e+00 : f32
    %133 = arith.divf %cst_45, %132 : f32
    %134 = vector.broadcast %133 : f32 to vector<1x128xf32>
    %135 = arith.mulf %129, %134 : vector<1x128xf32>
    %c7 = arith.constant 7 : index
    %c0_46 = arith.constant 0 : index
    %136 = vector.load %arg9[%c7, %c0_46] : memref<8x128xf32, #tpu.memory_space<vmem>>, vector<1x128xf32>
    tpu.vector_store %arg9[%c7, %c0_46], %135 {strides = array<i32>} : memref<8x128xf32, #tpu.memory_space<vmem>>, vector<1x128xf32>,
    %c0_47 = arith.constant 0 : index
    %c0_48 = arith.constant 0 : index
    %137 = vector.load %arg9[%c0_47, %c0_48] : memref<8x128xf32, #tpu.memory_space<vmem>>, vector<8x128xf32>
    %138 = arith.truncf %137 : vector<8x128xf32> to vector<8x128xbf16>
    %c0_49 = arith.constant 0 : index
    %c0_50 = arith.constant 0 : index
    %139 = vector.load %arg4[%c0_49, %c0_50] : memref<128x128xbf16, #tpu.memory_space<vmem>>, vector<128x128xbf16>
    %cst_51 = arith.constant dense<0.000000e+00> : vector<8x128xf32>
    %140 = tpu.matmul %138, %139, %cst_51 {dimension_numbers = #tpu.dot_dimension_numbers<[1], [0], [0], [1], [0, 0, 1, 1], [], []>} : vector<8x128xbf16>, vector<128x128xbf16>, vector<8x128xf32> -> vector<8x128xf32>
    %c0_52 = arith.constant 0 : index
    %c0_53 = arith.constant 0 : index
    %141 = vector.load %arg5[%c0_52, %c0_53] : memref<1x128xf32, #tpu.memory_space<vmem>>, vector<1x128xf32>
    %142 = vector.broadcast %141 : vector<1x128xf32> to vector<8x128xf32>
    %143 = arith.addf %140, %142 : vector<8x128xf32>
    %cst_54 = arith.constant 0.000000e+00 : f32
    %144 = vector.broadcast %cst_54 : f32 to vector<8x128xf32>
    %145 = arith.maximumf %143, %144 : vector<8x128xf32>
    %146 = arith.truncf %145 : vector<8x128xf32> to vector<8x128xbf16>
    %c0_55 = arith.constant 0 : index
    %c0_56 = arith.constant 0 : index
    %147 = vector.load %arg6[%c0_55, %c0_56] : memref<128x128xbf16, #tpu.memory_space<vmem>>, vector<128x128xbf16>
    %cst_57 = arith.constant dense<0.000000e+00> : vector<8x128xf32>
    %148 = tpu.matmul %146, %147, %cst_57 {dimension_numbers = #tpu.dot_dimension_numbers<[1], [0], [0], [1], [0, 0, 1, 1], [], []>} : vector<8x128xbf16>, vector<128x128xbf16>, vector<8x128xf32> -> vector<8x128xf32>
    %c0_58 = arith.constant 0 : index
    %c0_59 = arith.constant 0 : index
    %149 = vector.load %arg7[%c0_58, %c0_59] : memref<1x128xf32, #tpu.memory_space<vmem>>, vector<1x128xf32>
    %150 = vector.broadcast %149 : vector<1x128xf32> to vector<8x128xf32>
    %151 = arith.addf %148, %150 : vector<8x128xf32>
    %c0_60 = arith.constant 0 : index
    %c0_61 = arith.constant 0 : index
    %152 = vector.load %arg8[%c0_60, %c0_61] : memref<8x128xf32, #tpu.memory_space<vmem>>, vector<8x128xf32>
    tpu.vector_store %arg8[%c0_60, %c0_61], %151 {strides = array<i32>} : memref<8x128xf32, #tpu.memory_space<vmem>>, vector<8x128xf32>,
    return
  }
  func.func @transform_0(%arg0: i32, %arg1: memref<9xi32, #tpu.memory_space<smem>>, %arg2: memref<16xi32, #tpu.memory_space<smem>>) -> (i32, i32) {
    %c0_i32 = arith.constant 0 : i32
    %c0_i32_0 = arith.constant 0 : i32
    %c0_i32_1 = arith.constant 0 : i32
    return %c0_i32, %c0_i32_0 : i32, i32
  }
  func.func @transform_1(%arg0: i32, %arg1: memref<9xi32, #tpu.memory_space<smem>>, %arg2: memref<16xi32, #tpu.memory_space<smem>>) -> (i32, i32) {
    %c0_i32 = arith.constant 0 : i32
    %c0_i32_0 = arith.constant 0 : i32
    %c0_i32_1 = arith.constant 0 : i32
    return %c0_i32, %c0_i32_0 : i32, i32
  }
  func.func @transform_2(%arg0: i32, %arg1: memref<9xi32, #tpu.memory_space<smem>>, %arg2: memref<16xi32, #tpu.memory_space<smem>>) -> (i32, i32) {
    %c0_i32 = arith.constant 0 : i32
    %c0_i32_0 = arith.constant 0 : i32
    %c0_i32_1 = arith.constant 0 : i32
    return %c0_i32, %c0_i32_0 : i32, i32
  }
  func.func @transform_3(%arg0: i32, %arg1: memref<9xi32, #tpu.memory_space<smem>>, %arg2: memref<16xi32, #tpu.memory_space<smem>>) -> (i32, i32) {
    %c0_i32 = arith.constant 0 : i32
    %c0_i32_0 = arith.constant 0 : i32
    %c0_i32_1 = arith.constant 0 : i32
    return %c0_i32, %c0_i32_0 : i32, i32
  }
  func.func @transform_4(%arg0: i32, %arg1: memref<9xi32, #tpu.memory_space<smem>>, %arg2: memref<16xi32, #tpu.memory_space<smem>>) -> (i32, i32) {
    %c0_i32 = arith.constant 0 : i32
    %c0_i32_0 = arith.constant 0 : i32
    %c0_i32_1 = arith.constant 0 : i32
    return %c0_i32, %c0_i32_0 : i32, i32
  }
  func.func @transform_5(%arg0: i32, %arg1: memref<9xi32, #tpu.memory_space<smem>>, %arg2: memref<16xi32, #tpu.memory_space<smem>>) -> (i32, i32) {
    %c0_i32 = arith.constant 0 : i32
    %c0_i32_0 = arith.constant 0 : i32
    return %arg0, %c0_i32 : i32, i32
  }
}

</mosaic_0001>

<bundles_post_ra>
// kernel: tpu_custom_call.1
= control target key start
LH: loop header
LB: loop body
LE: loop exit
PB: predicated region body
PF: predicated region fallthrough
CT: control target
= control target key end

     0   :  { %s1433_s0 = inlined_call_operand.hbm [shape: s32[9], index: 0, kind: input, shape index: {}]   ;;  %s1434_s2 = inlined_call_operand.hbm [shape: f32[32,128], index: 2, kind: input, shape index: {}]   ;;  %s1435_s3 = inlined_call_operand.hbm [shape: bf16[128,128], index: 3, kind: input, shape index: {}]   ;;  %s1436_s4 = inlined_call_operand.vmem [shape: f32[1,128], index: 4, kind: input, shape index: {}]   ;;  %s1437_s5 = inlined_call_operand.hbm [shape: bf16[128,128], index: 5, kind: input, shape index: {}]   ;;  %s1438_s6 = inlined_call_operand.vmem [shape: f32[1,128], index: 6, kind: input, shape index: {}]   ;;  %s1439_s7 = inlined_call_operand.hbm [shape: f32[8,128], index: 7, kind: output, shape index: {}]   ;;  %s1440_s1 = inlined_call_operand.vmem [shape: s32[16], index: 1, kind: input, shape index: {}]  }
   0x1   :  { %s917_s26 = scalar_lea.hbm %s1433_s0, 16 }
   0x2   :  { %p918_p0 = scmp.ne.s32.totalorder %s1433_s0, %s917_s26  ;;  %p921_p1 = scmp.lt.u32.totalorder %s917_s26, %s1433_s0 }
   0x4   :  { %p923_p2 = pnand %p921_p1, %p918_p0 }
   0x6   :  { %926 = shalt.err (!%p923_p2)  }
   0x7   :  { %s1227_s8 = smov [#allocation4]   ;;  %s14_s13 = sshll.u32 %s1440_s1, 4  ;;  %s15_s13 = int_to_ptr.vmem [resolvable:$true] %s14_s13 }
   0x8   :  { %13 = dma.hbm_to_smem %s1433_s0, 16, %s1227_s8, [#allocation3] }
   0x9   :  { %s927_s14 = scalar_lea.vmem %s15_s13, 16  ;;  %p932_p4 = scmp.lt.s32.totalorder %s15_s13, %s15_s13 }
   0xa   :  { %p928_p3 = scmp.ne.s32.totalorder %s15_s13, %s927_s14  ;;  %p933_p5 = scmp.lt.s32.totalorder %s927_s14, %s927_s14 }
   0xc   :  { %p934_p6 = por %p933_p5, %p932_p4 }
   0xe   :  { %p935_p7 = pnand %p934_p6, %p928_p3 }
  0x10   :  { %938 = shalt.err (!%p935_p7)  }
  0x11   :  { %s1228_s15 = smov [#allocation5]  }
  0x12   :  { %17 = dma.vmem_to_smem %s15_s13, 16, %s1228_s15, [#allocation3] }
  0x13   :  { %1123 = dma.done.wait [#allocation3], 32 }
  0x14   :  { %1124 = vsyncadd [#allocation3], 4294967264 }
  0x15   :  { %19 = sfence }
  0x16   :  { %20 = vsyncpa [#allocation7], 0 }
  0x17   :  { %21 = vsyncpa [#allocation10], 0 }
  0x18   :  { %22 = vsyncpa [#allocation8], 0  ;;  %s1229_s0 = smov [#allocation9]   ;;  %s939_s18 = scalar_lea.hbm %s1435_s3, 1024 }
  0x19   :  { %s40_s16 = sshll.u32 %s1229_s0, 4  ;;  %p940_p8 = scmp.ne.s32.totalorder %s1435_s3, %s939_s18  ;;  %s41_s16 = int_to_ptr.vmem [resolvable:$true] %s40_s16 }
  0x1a   :  { %p943_p9 = scmp.lt.u32.totalorder %s939_s18, %s1435_s3 }
  0x1c   :  { %p945_p10 = pnand %p943_p9, %p940_p8 }
  0x1e   :  { %948 = shalt.err (!%p945_p10)
}
  0x1f   :  { %s949_s23 = scalar_lea.vmem %s41_s16, 1024  ;;  %p954_p12 = scmp.lt.s32.totalorder %s41_s16, %s41_s16 }
  0x20   :  { %p950_p11 = scmp.ne.s32.totalorder %s41_s16, %s949_s23  ;;  %p955_p13 = scmp.lt.s32.totalorder %s949_s23, %s949_s23 }
  0x22   :  { %p956_p0 = por %p955_p13, %p954_p12 }
  0x24   :  { %p957_p1 = pnand %p956_p0, %p950_p11 }
  0x26   :  { %960 = shalt.err (!%p957_p1)
}
  0x27   :  { %s1230_s24 = smov 64   ;;  %s1231_s25 = smov 4  }
  0x28   :  { %46 = dma.hbm_to_vmem [thread:$0]  %s1435_s3, 1024, %s41_s16, [#allocation10], %s1230_s24, %s1230_s24, %s1231_s25  }
  0x29   :  { %s1232_s28 = smov [#allocation6]   ;;  %s961_s9 = scalar_lea.hbm %s1434_s2, 512 }
  0x2a   :  { %s28_s29 = sshll.u32 %s1232_s28, 4  ;;  %p962_p2 = scmp.ne.s32.totalorder %s1434_s2, %s961_s9  ;;  %s29_s29 = int_to_ptr.vmem [resolvable:$true] %s28_s29 }
  0x2b   :  { %p965_p3 = scmp.lt.u32.totalorder %s961_s9, %s1434_s2 }
  0x2d   :  { %p967_p4 = pnand %p965_p3, %p962_p2 }
  0x2f   :  { %970 = shalt.err (!%p967_p4)
}
  0x30   :  { %s971_s14 = scalar_lea.vmem %s29_s29, 512  ;;  %p976_p6 = scmp.lt.s32.totalorder %s29_s29, %s29_s29 }
  0x31   :  { %p972_p5 = scmp.ne.s32.totalorder %s29_s29, %s971_s14  ;;  %p977_p7 = scmp.lt.s32.totalorder %s971_s14, %s971_s14 }
  0x33   :  { %p978_p8 = por %p977_p7, %p976_p6 }
  0x35   :  { %p979_p9 = pnand %p978_p8, %p972_p5 }
  0x37   :  { %982 = shalt.err (!%p979_p9)
}
  0x38   :  { %s1233_s3 = smov 128   ;;  %s1234_s15 = smov 8  }
  0x39   :  { %34 = dma.hbm_to_vmem [thread:$0]  %s1434_s2, 512, %s29_s29, [#allocation7], %s1233_s3, %s1233_s3, %s1234_s15  }
  0x3a   :  { %s1235_s1 = smov [#allocation11]   ;;  %s983_s20 = scalar_lea.hbm %s1437_s5, 1024 }
  0x3b   :  { %s54_s17 = sshll.u32 %s1235_s1, 4  ;;  %p984_p10 = scmp.ne.s32.totalorder %s1437_s5, %s983_s20  ;;  %s55_s17 = int_to_ptr.vmem [resolvable:$true] %s54_s17 }
  0x3c   :  { %p987_p11 = scmp.lt.u32.totalorder %s983_s20, %s1437_s5 }
  0x3e   :  { %p989_p12 = pnand %p987_p11, %p984_p10 }
  0x40   :  { %992 = shalt.err (!%p989_p12)
}
  0x41   :  { %s993_s27 = scalar_lea.vmem %s55_s17, 1024  ;;  %p998_p0 = scmp.lt.s32.totalorder %s55_s17, %s55_s17 }
  0x42   :  { %p994_p13 = scmp.ne.s32.totalorder %s55_s17, %s993_s27  ;;  %p999_p1 = scmp.lt.s32.totalorder %s993_s27, %s993_s27 }
  0x44   :  { %p1000_p2 = por %p999_p1, %p998_p0 }
  0x46   :  { %p1001_p3 = pnand %p1000_p2, %p994_p13 }
  0x48   :  { %1004 = shalt.err (!%p1001_p3)
}
  0x49   :  { %60 = dma.hbm_to_vmem [thread:$0]  %s1437_s5, 1024, %s55_s17, [#allocation10], %s1230_s24, %s1230_s24, %s1231_s25  }
  0x4a   :  { %1125 = dma.done.wait [#allocation7], 512  }
  0x4b   :  { %1126 = vsyncadd [#allocation7], 4294966784 }
  0x4c   :  { %1127 = dma.done.wait [#allocation10], 2048  }
  0x4d   :  { %1128 = vsyncadd [#allocation10], 4294965248  ;;  %s74_s29 = sld [smem:[#allocation4]]   ;;  %s573_s30 = sld [smem:[#allocation4 + $0x1]]  ;;  %v1139_v0 = vmov 0.0  }
  0x53   :  { %p510_p4 = scmp.ge.s32.totalorder %s74_s29, %s573_s30 }
  0x54   :  { %v1131_v1 = vmov (!%p510_p4), 0.0   ;;  %s1135_s8 = smov (!%p510_p4), %s74_s29  }
  0x55   :  { %512 = sbr.rel (%p510_p4) target bundleno = 103 (0x67), region = 110 }
  0x5c LB: > { %s84_s9 = sld [smem:[#allocation5 + %s1137_s8]]  ;;  %s80_s8 = sadd.s32 1, %s1137_s8   ;;  %s1137_s8 = sphi %s1135_s8, %s80_s8   ;;  %v1133_v1 = vphi %v1131_v1, %v1132_v1  }
  0x5d   : > { %p79_p5 = scmp.ge.s32.totalorder %s80_s8, %s573_s30 }
  0x60   :  { %82 = sbr.rel (!%p79_p5) target bundleno = 92 (0x5c), region = 116 }
  0x62   : > { %s85_s10 = scalar_lea.vmem [#allocation6], %s84_s9 }
  0x63   : > { %v86_v2 = vld [vmem:[%s85_s10] sm:$0x1] }
  0x64   : > { %v87_v3 = vadd.f32 %v1133_v1, %v86_v2  }
  0x66   : > { %v1132_v1 = vmov %v87_v3   ;;  %v1140_v0 = vmov (%p79_p5), %v87_v3  }
  0x67 PF:  { %s88_s5 = ssub.s32 %s573_s30, %s74_s29  ;;  %s1337_s25 = sld [smem:[#allocation4 + $0x1]]   ;;  %v1151_v8 = vmov 0.0   ;;  %v1141_v0 = vphi %v1139_v0, %v1140_v0  }
  0x68   :  { %s89_s24 = scvt.s32.f32 %s88_s5  ;;  %s1339_s11 = sld [smem:[#allocation4 + $0x2]] }
  0x69   :  { %s1236_s12 = smov 1.0  }
  0x6a   :  { %s90_s13 = smax.f32 %s1236_s12, %s89_s24 }
  0x6b   :  { %v91_v4 = vstv %s90_s13 }
  0x6c   :  { %885 = vrcp.f32 %v91_v4 }
  0x6e   :  { %p518_p6 = scmp.ge.s32.totalorder %s1337_s25, %s1339_s11 }
  0x6f   :  { %v1143_v9 = vmov (!%p518_p6), 0.0   ;;  %s1147_s3 = smov (!%p518_p6), %s1337_s25  }
  0x76   :  { %v886_v5 = vpop.eup %885 }
  0x77   :  { %664 = vpush %v886_v5 }
  0xa6   :  { %520 = sbr.rel (%p518_p6) target bundleno = 184 (0xb8), region = 121 }
  0xa8   :  { %s665_s14 = spop %664 }
  0xa9   :  { %v94_v6 = vstv %s665_s14 }
  0xaa   :  { %v95_v7 = vmul.f32 %v1141_v0, %v94_v6 }
  0xac   :  { %96 = vst [vmem:[#allocation2] sm:$0x1] %v95_v7 }
  0xad LB: > { %s107_s15 = sld [smem:[#allocation5 + %s1149_s3]]  ;;  %s103_s3 = sadd.s32 1, %s1149_s3   ;;  %s1149_s3 = sphi %s1147_s3, %s103_s3   ;;  %v1145_v9 = vphi %v1143_v9, %v1144_v9  }
  0xae   : > { %p102_p7 = scmp.ge.s32.totalorder %s103_s3, %s1339_s11 }
  0xb1   :  { %105 = sbr.rel (!%p102_p7) target bundleno = 173 (0xad), region = 127 }
  0xb3   : > { %s108_s0 = scalar_lea.vmem [#allocation6], %s107_s15 }
  0xb4   : > { %v109_v10 = vld [vmem:[%s108_s0] sm:$0x1] }
  0xb5   : > { %v110_v11 = vadd.f32 %v1145_v9, %v109_v10  }
  0xb7   : > { %v1144_v9 = vmov %v110_v11   ;;  %v1152_v8 = vmov (%p102_p7), %v110_v11  }
  0xb8 PF:  { %s111_s16 = ssub.s32 %s1339_s11, %s1337_s25  ;;  %s1348_s1 = sld [smem:[#allocation4 + $0x2]]   ;;  %v1163_v16 = vmov 0.0   ;;  %v1153_v8 = vphi %v1151_v8, %v1152_v8  }
  0xb9   :  { %s112_s17 = scvt.s32.f32 %s111_s16  ;;  %s1350_s18 = sld [smem:[#allocation4 + $0x3]] }
  0xbb   :  { %s113_s19 = smax.f32 %s1236_s12, %s112_s17 }
  0xbc   :  { %v114_v12 = vstv %s113_s19 }
  0xbd   :  { %887 = vrcp.f32 %v114_v12 }
  0xbf   :  { %p526_p8 = scmp.ge.s32.totalorder %s1348_s1, %s1350_s18 }
  0xc0   :  { %v1155_v17 = vmov (!%p526_p8), 0.0   ;;  %s1159_s21 = smov (!%p526_p8), %s1348_s1  }
  0xc7   :  { %v888_v13 = vpop.eup %887 }
  0xc8   :  { %666 = vpush %v888_v13 }
  0xf7   :  { %528 = sbr.rel (%p526_p8) target bundleno = 265 (0x109), region = 132 }
  0xf9   :  { %s667_s20 = spop %666 }
  0xfa   :  { %v117_v14 = vstv %s667_s20 }
  0xfb   :  { %v118_v15 = vmul.f32 %v1153_v8, %v117_v14 }
  0xfd   :  { %119 = vst [vmem:[#allocation2 + $0x1] sm:$0x1] %v118_v15 }
  0xfe LB: > { %s130_s22 = sld [smem:[#allocation5 + %s1161_s21]]  ;;  %s126_s21 = sadd.s32 1, %s1161_s21   ;;  %s1161_s21 = sphi %s1159_s21, %s126_s21   ;;  %v1157_v17 = vphi %v1155_v17, %v1156_v17  }
  0xff   : > { %p125_p9 = scmp.ge.s32.totalorder %s126_s21, %s1350_s18 }
 0x102   :  { %128 = sbr.rel (!%p125_p9) target bundleno = 254 (0xfe), region = 138 }
 0x104   : > { %s131_s23 = scalar_lea.vmem [#allocation6], %s130_s22 }
 0x105   : > { %v132_v18 = vld [vmem:[%s131_s23] sm:$0x1] }
 0x106   : > { %v133_v19 = vadd.f32 %v1157_v17, %v132_v18  }
 0x108   : > { %v1156_v17 = vmov %v133_v19   ;;  %v1164_v16 = vmov (%p125_p9), %v133_v19  }
 0x109 PF:  { %s134_s26 = ssub.s32 %s1350_s18, %s1348_s1  ;;  %s1359_s27 = sld [smem:[#allocation4 + $0x3]]   ;;  %v1175_v24 = vmov 0.0   ;;  %v1165_v16 = vphi %v1163_v16, %v1164_v16  }
 0x10a   :  { %s135_s2 = scvt.s32.f32 %s134_s26  ;;  %s1361_s28 = sld [smem:[#allocation4 + $0x4]] }
 0x10c   :  { %s136_s29 = smax.f32 %s1236_s12, %s135_s2 }
 0x10d   :  { %v137_v20 = vstv %s136_s29 }
 0x10e   :  { %889 = vrcp.f32 %v137_v20 }
 0x110   :  { %p534_p10 = scmp.ge.s32.totalorder %s1359_s27, %s1361_s28 }
 0x111   :  { %v1167_v25 = vmov (!%p534_p10), 0.0   ;;  %s1171_s8 = smov (!%p534_p10), %s1359_s27  }
 0x118   :  { %v890_v21 = vpop.eup %889 }
 0x119   :  { %668 = vpush %v890_v21 }
 0x148   :  { %536 = sbr.rel (%p534_p10) target bundleno = 346 (0x15a), region = 143 }
 0x14a   :  { %s669_s30 = spop %668 }
 0x14b   :  { %v140_v22 = vstv %s669_s30 }
 0x14c   :  { %v141_v23 = vmul.f32 %v1165_v16, %v140_v22 }
 0x14e   :  { %142 = vst [vmem:[#allocation2 + $0x2] sm:$0x1] %v141_v23 }
 0x14f LB: > { %s153_s9 = sld [smem:[#allocation5 + %s1173_s8]]  ;;  %s149_s8 = sadd.s32 1, %s1173_s8   ;;  %s1173_s8 = sphi %s1171_s8, %s149_s8   ;;  %v1169_v25 = vphi %v1167_v25, %v1168_v25  }
 0x150   : > { %p148_p11 = scmp.ge.s32.totalorder %s149_s8, %s1361_s28 }
 0x153   :  { %151 = sbr.rel (!%p148_p11) target bundleno = 335 (0x14f), region = 149 }
 0x155   : > { %s154_s10 = scalar_lea.vmem [#allocation6], %s153_s9 }
 0x156   : > { %v155_v26 = vld [vmem:[%s154_s10] sm:$0x1] }
 0x157   : > { %v156_v27 = vadd.f32 %v1169_v25, %v155_v26  }
 0x159   : > { %v1168_v25 = vmov %v156_v27   ;;  %v1176_v24 = vmov (%p148_p11), %v156_v27  }
 0x15a PF:  { %s157_s5 = ssub.s32 %s1361_s28, %s1359_s27  ;;  %s1370_s24 = sld [smem:[#allocation4 + $0x4]]   ;;  %v1187_v32 = vmov 0.0   ;;  %v1177_v24 = vphi %v1175_v24, %v1176_v24  }
 0x15b   :  { %s158_s25 = scvt.s32.f32 %s157_s5  ;;  %s1372_s11 = sld [smem:[#allocation4 + $0x5]] }
 0x15d   :  { %s159_s13 = smax.f32 %s1236_s12, %s158_s25 }
 0x15e   :  { %v160_v28 = vstv %s159_s13 }
 0x15f   :  { %891 = vrcp.f32 %v160_v28 }
 0x161   :  { %p542_p12 = scmp.ge.s32.totalorder %s1370_s24, %s1372_s11 }
 0x162   :  { %v1179_v33 = vmov (!%p542_p12), 0.0   ;;  %s1183_s3 = smov (!%p542_p12), %s1370_s24  }
 0x169   :  { %v892_v29 = vpop.eup %891 }
 0x16a   :  { %670 = vpush %v892_v29 }
 0x199   :  { %544 = sbr.rel (%p542_p12) target bundleno = 427 (0x1ab), region = 154 }
 0x19b   :  { %s671_s14 = spop %670 }
 0x19c   :  { %v163_v30 = vstv %s671_s14 }
 0x19d   :  { %v164_v31 = vmul.f32 %v1177_v24, %v163_v30 }
 0x19f   :  { %165 = vst [vmem:[#allocation2 + $0x3] sm:$0x1] %v164_v31 }
 0x1a0 LB: > { %s176_s15 = sld [smem:[#allocation5 + %s1185_s3]]  ;;  %s172_s3 = sadd.s32 1, %s1185_s3   ;;  %s1185_s3 = sphi %s1183_s3, %s172_s3   ;;  %v1181_v33 = vphi %v1179_v33, %v1180_v33  }
 0x1a1   : > { %p171_p13 = scmp.ge.s32.totalorder %s172_s3, %s1372_s11 }
 0x1a4   :  { %174 = sbr.rel (!%p171_p13) target bundleno = 416 (0x1a0), region = 160 }
 0x1a6   : > { %s177_s0 = scalar_lea.vmem [#allocation6], %s176_s15 }
 0x1a7   : > { %v178_v34 = vld [vmem:[%s177_s0] sm:$0x1] }
 0x1a8   : > { %v179_v35 = vadd.f32 %v1181_v33, %v178_v34  }
 0x1aa   : > { %v1180_v33 = vmov %v179_v35   ;;  %v1188_v32 = vmov (%p171_p13), %v179_v35  }
 0x1ab PF:  { %s180_s16 = ssub.s32 %s1372_s11, %s1370_s24  ;;  %s1381_s1 = sld [smem:[#allocation4 + $0x5]]   ;;  %v1199_v40 = vmov 0.0   ;;  %v1189_v32 = vphi %v1187_v32, %v1188_v32  }
 0x1ac   :  { %s181_s17 = scvt.s32.f32 %s180_s16  ;;  %s1383_s18 = sld [smem:[#allocation4 + $0x6]] }
 0x1ae   :  { %s182_s19 = smax.f32 %s1236_s12, %s181_s17 }
 0x1af   :  { %v183_v36 = vstv %s182_s19 }
 0x1b0   :  { %893 = vrcp.f32 %v183_v36 }
 0x1b2   :  { %p550_p0 = scmp.ge.s32.totalorder %s1381_s1, %s1383_s18 }
 0x1b3   :  { %v1191_v41 = vmov (!%p550_p0), 0.0   ;;  %s1195_s21 = smov (!%p550_p0), %s1381_s1  }
 0x1ba   :  { %v894_v37 = vpop.eup %893 }
 0x1bb   :  { %672 = vpush %v894_v37 }
 0x1ea   :  { %552 = sbr.rel (%p550_p0) target bundleno = 508 (0x1fc), region = 165 }
 0x1ec   :  { %s673_s20 = spop %672 }
 0x1ed   :  { %v186_v38 = vstv %s673_s20 }
 0x1ee   :  { %v187_v39 = vmul.f32 %v1189_v32, %v186_v38 }
 0x1f0   :  { %188 = vst [vmem:[#allocation2 + $0x4] sm:$0x1] %v187_v39 }
 0x1f1 LB: > { %s199_s22 = sld [smem:[#allocation5 + %s1197_s21]]  ;;  %s195_s21 = sadd.s32 1, %s1197_s21   ;;  %s1197_s21 = sphi %s1195_s21, %s195_s21   ;;  %v1193_v41 = vphi %v1191_v41, %v1192_v41  }
 0x1f2   : > { %p194_p1 = scmp.ge.s32.totalorder %s195_s21, %s1383_s18 }
 0x1f5   :  { %197 = sbr.rel (!%p194_p1) target bundleno = 497 (0x1f1), region = 171 }
 0x1f7   : > { %s200_s23 = scalar_lea.vmem [#allocation6], %s199_s22 }
 0x1f8   : > { %v201_v42 = vld [vmem:[%s200_s23] sm:$0x1] }
 0x1f9   : > { %v202_v43 = vadd.f32 %v1193_v41, %v201_v42  }
 0x1fb   : > { %v1192_v41 = vmov %v202_v43   ;;  %v1200_v40 = vmov (%p194_p1), %v202_v43  }
 0x1fc PF:  { %s203_s26 = ssub.s32 %s1383_s18, %s1381_s1  ;;  %s1392_s27 = sld [smem:[#allocation4 + $0x6]]   ;;  %v1211_v48 = vmov 0.0   ;;  %v1201_v40 = vphi %v1199_v40, %v1200_v40  }
 0x1fd   :  { %s204_s2 = scvt.s32.f32 %s203_s26  ;;  %s1394_s28 = sld [smem:[#allocation4 + $0x7]] }
 0x1ff   :  { %s205_s29 = smax.f32 %s1236_s12, %s204_s2 }
 0x200   :  { %v206_v44 = vstv %s205_s29 }
 0x201   :  { %895 = vrcp.f32 %v206_v44 }
 0x203   :  { %p558_p2 = scmp.ge.s32.totalorder %s1392_s27, %s1394_s28 }
 0x204   :  { %v1203_v49 = vmov (!%p558_p2), 0.0   ;;  %s1207_s8 = smov (!%p558_p2), %s1392_s27  }
 0x20b   :  { %v896_v45 = vpop.eup %895 }
 0x20c   :  { %674 = vpush %v896_v45 }
 0x23b   :  { %560 = sbr.rel (%p558_p2) target bundleno = 589 (0x24d), region = 176 }
 0x23d   :  { %s675_s30 = spop %674 }
 0x23e   :  { %v209_v46 = vstv %s675_s30 }
 0x23f   :  { %v210_v47 = vmul.f32 %v1201_v40, %v209_v46 }
 0x241   :  { %211 = vst [vmem:[#allocation2 + $0x5] sm:$0x1] %v210_v47 }
 0x242 LB: > { %s222_s9 = sld [smem:[#allocation5 + %s1209_s8]]  ;;  %s218_s8 = sadd.s32 1, %s1209_s8   ;;  %s1209_s8 = sphi %s1207_s8, %s218_s8   ;;  %v1205_v49 = vphi %v1203_v49, %v1204_v49  }
 0x243   : > { %p217_p3 = scmp.ge.s32.totalorder %s218_s8, %s1394_s28 }
 0x246   :  { %220 = sbr.rel (!%p217_p3) target bundleno = 578 (0x242), region = 182 }
 0x248   : > { %s223_s10 = scalar_lea.vmem [#allocation6], %s222_s9 }
 0x249   : > { %v224_v50 = vld [vmem:[%s223_s10] sm:$0x1] }
 0x24a   : > { %v225_v51 = vadd.f32 %v1205_v49, %v224_v50  }
 0x24c   : > { %v1204_v49 = vmov %v225_v51   ;;  %v1212_v48 = vmov (%p217_p3), %v225_v51  }
 0x24d PF:  { %s226_s5 = ssub.s32 %s1394_s28, %s1392_s27  ;;  %s1403_s24 = sld [smem:[#allocation4 + $0x7]]   ;;  %v1223_v56 = vmov 0.0   ;;  %v1213_v48 = vphi %v1211_v48, %v1212_v48  }
 0x24e   :  { %s227_s25 = scvt.s32.f32 %s226_s5  ;;  %s1405_s11 = sld [smem:[#allocation4 + $0x8]] }
 0x250   :  { %s228_s13 = smax.f32 %s1236_s12, %s227_s25 }
 0x251   :  { %v229_v52 = vstv %s228_s13 }
 0x252   :  { %897 = vrcp.f32 %v229_v52 }
 0x254   :  { %p566_p4 = scmp.ge.s32.totalorder %s1403_s24, %s1405_s11 }
 0x255   :  { %v1215_v57 = vmov (!%p566_p4), 0.0   ;;  %s1219_s3 = smov (!%p566_p4), %s1403_s24  }
 0x25c   :  { %v898_v53 = vpop.eup %897 }
 0x25d   :  { %676 = vpush %v898_v53 }
 0x28c   :  { %568 = sbr.rel (%p566_p4) target bundleno = 670 (0x29e), region = 187 }
 0x28e   :  { %s677_s14 = spop %676 }
 0x28f   :  { %v232_v54 = vstv %s677_s14 }
 0x290   :  { %v233_v55 = vmul.f32 %v1213_v48, %v232_v54 }
 0x292   :  { %234 = vst [vmem:[#allocation2 + $0x6] sm:$0x1] %v233_v55 }
 0x293 LB: > { %s245_s15 = sld [smem:[#allocation5 + %s1221_s3]]  ;;  %s241_s3 = sadd.s32 1, %s1221_s3   ;;  %s1221_s3 = sphi %s1219_s3, %s241_s3   ;;  %v1217_v57 = vphi %v1215_v57, %v1216_v57  }
 0x294   : > { %p240_p5 = scmp.ge.s32.totalorder %s241_s3, %s1405_s11 }
 0x297   :  { %243 = sbr.rel (!%p240_p5) target bundleno = 659 (0x293), region = 193 }
 0x299   : > { %s246_s0 = scalar_lea.vmem [#allocation6], %s245_s15 }
 0x29a   : > { %v247_v58 = vld [vmem:[%s246_s0] sm:$0x1] }
 0x29b   : > { %v248_v59 = vadd.f32 %v1217_v57, %v247_v58  }
 0x29d   : > { %v1216_v57 = vmov %v248_v59   ;;  %v1224_v56 = vmov (%p240_p5), %v248_v59  }
 0x29e PF:  { %s249_s16 = ssub.s32 %s1405_s11, %s1403_s24  ;;  %v899_v60 = vld [vmem:[#allocation9] sm:$0xff]   ;;  %v1237_v61 = vmov 0.0   ;;  %v900_v62 = vld [vmem:[#allocation9 + $0x8] sm:$0xff]   ;;  %vm1238_vm0 = vmmov 0   ;;  %v901_v0 = vld [vmem:[#allocation9 + $0x10] sm:$0xff]   ;;  %s1239_s22 = smov [#allocation12]   ;;  %v1225_v56 = vphi %v1223_v56, %v1224_v56  }
 0x29f   :  { %s250_s1 = scvt.s32.f32 %s249_s16  ;;  %624 = vmatprep.subr.bf16.mxu0 %v1237_v61  ;;  %644 = vmatprep.subr.bf16.mxu1 %v1237_v61  ;;  %v907_v1 = vld [vmem:[#allocation11] sm:$0xff]   ;;  %v902_v2 = vld [vmem:[#allocation9 + $0x18] sm:$0xff]   ;;  %v908_v3 = vld [vmem:[#allocation11 + $0x8] sm:$0xff]   ;;  %s491_s23 = sshll.u32 %s1239_s22, 4  ;;  %s492_s23 = int_to_ptr.vmem [resolvable:$true] %s491_s23 }
 0x2a0   :  { %625 = vmatpush3.bf16.msra.mxu0 %v899_v60  ;;  %640 = vmatprep.mubr.msk.bf16.mxu0 %vm1238_vm0, %v1237_v61  ;;  %v903_v4 = vld [vmem:[#allocation9 + $0x20] sm:$0xff]   ;;  %v909_v5 = vld [vmem:[#allocation11 + $0x10] sm:$0xff]   ;;  %v904_v7 = vld [vmem:[#allocation9 + $0x28] sm:$0xff]   ;;  %p1010_p7 = scmp.lt.s32.totalorder %s492_s23, %s492_s23 }
 0x2a1   :  { %s251_s17 = smax.f32 %s1236_s12, %s250_s1  ;;  %626 = vmatprep.subr.bf16.mxu0 %v1237_v61  ;;  %660 = vmatprep.mubr.msk.bf16.mxu1 %vm1238_vm0, %v1237_v61  ;;  %v910_v8 = vld [vmem:[#allocation11 + $0x18] sm:$0xff]   ;;  %v905_v9 = vld [vmem:[#allocation9 + $0x30] sm:$0xff]   ;;  %v911_v10 = vld [vmem:[#allocation11 + $0x20] sm:$0xff]  }
 0x2a2   :  { %v252_v63 = vstv %s251_s17  ;;  %645 = vmatpush3.bf16.msra.mxu1 %v907_v1  ;;  %v906_v11 = vld [vmem:[#allocation9 + $0x38] sm:$0xff]   ;;  %v912_v12 = vld [vmem:[#allocation11 + $0x28] sm:$0xff]   ;;  %v913_v17 = vld [vmem:[#allocation11 + $0x30] sm:$0xff]  }
 0x2a3   :  { %915 = vrcp.f32 %v252_v63  ;;  %646 = vmatprep.subr.bf16.mxu1 %v1237_v61  ;;  %v914_v18 = vld [vmem:[#allocation11 + $0x38] sm:$0xff]  }
 0x2a4   :  { %627 = vmatpush3.bf16.msra.mxu0 %v900_v62  ;;  %v588_v19 = vld [vmem:[%s1436_s4] ss:$0 sm:$0xff]  ;;  %s1005_s4 = scalar_lea.vmem %s492_s23, 128 }
 0x2a5   :  { %628 = vmatprep.subr.bf16.mxu0 %v1237_v61  ;;  %v597_v27 = vld [vmem:[%s1438_s6] ss:$0 sm:$0xff]  ;;  %p1006_p6 = scmp.ne.s32.totalorder %s492_s23, %s1005_s4  ;;  %p1011_p8 = scmp.lt.s32.totalorder %s1005_s4, %s1005_s4 }
 0x2a6   :  { %647 = vmatpush3.bf16.msra.mxu1 %v908_v3 }
 0x2a7   :  { %648 = vmatprep.subr.bf16.mxu1 %v1237_v61  ;;  %p1012_p9 = por %p1011_p8, %p1010_p7 }
 0x2a8   :  { %629 = vmatpush3.bf16.msra.mxu0 %v901_v0 }
 0x2a9   :  { %630 = vmatprep.subr.bf16.mxu0 %v1237_v61  ;;  %p1013_p10 = pnand %p1012_p9, %p1006_p6 }
 0x2aa   :  { %649 = vmatpush3.bf16.msra.mxu1 %v909_v5 }
 0x2ab   :  { %650 = vmatprep.subr.bf16.mxu1 %v1237_v61 }
 0x2ac   :  { %631 = vmatpush3.bf16.msra.mxu0 %v902_v2 }
 0x2ad   :  { %v916_v6 = vpop.eup %915  ;;  %632 = vmatprep.subr.bf16.mxu0 %v1237_v61 }
 0x2ae   :  { %678 = vpush %v916_v6  ;;  %651 = vmatpush3.bf16.msra.mxu1 %v910_v8 }
 0x2af   :  { %652 = vmatprep.subr.bf16.mxu1 %v1237_v61 }
 0x2b0   :  { %633 = vmatpush3.bf16.msra.mxu0 %v903_v4 }
 0x2b1   :  { %634 = vmatprep.subr.bf16.mxu0 %v1237_v61 }
 0x2b2   :  { %653 = vmatpush3.bf16.msra.mxu1 %v911_v10 }
 0x2b3   :  { %654 = vmatprep.subr.bf16.mxu1 %v1237_v61 }
 0x2b4   :  { %635 = vmatpush3.bf16.msra.mxu0 %v904_v7 }
 0x2b5   :  { %636 = vmatprep.subr.bf16.mxu0 %v1237_v61 }
 0x2b6   :  { %655 = vmatpush3.bf16.msra.mxu1 %v912_v12 }
 0x2b7   :  { %656 = vmatprep.subr.bf16.mxu1 %v1237_v61 }
 0x2b8   :  { %637 = vmatpush3.bf16.msra.mxu0 %v905_v9 }
 0x2b9   :  { %638 = vmatprep.subr.bf16.mxu0 %v1237_v61 }
 0x2ba   :  { %657 = vmatpush3.bf16.msra.mxu1 %v913_v17 }
 0x2bb   :  { %658 = vmatprep.subr.bf16.mxu1 %v1237_v61 }
 0x2bc   :  { %639 = vmatpush3.bf16.msra.mxu0 %v906_v11 }
 0x2be   :  { %659 = vmatpush3.bf16.msra.mxu1 %v914_v18 }
 0x2df   :  { %s679_s12 = spop %678 }
 0x2e0   :  { %v255_v13 = vstv %s679_s12 }
 0x2e1   :  { %v256_v14 = vmul.f32 %v1225_v56, %v255_v13 }
 0x2e3   :  { %257 = vst [vmem:[#allocation2 + $0x7] sm:$0x1] %v256_v14 }
 0x2ea   :  { %v258_v15 = vld [vmem:[#allocation2] sm:$0xff] }
 0x2eb   :  { %v259_v16 = vpack.c.bf16 %v258_v15, %v258_v15 }
 0x2ed   :  { %641 = vmatmul.mubr.bf16.vlgmr.msra.gmra.mrb[0].mxu0 %v259_v16 }
 0x3c0   :  { %v365_v20 = vpop.f32.mrb[0].mxu0 }
 0x3c1   :  { %v366_v21 = vadd.f32 %v588_v19, %v365_v20  ;;  %v642_v22 = vpop.f32.mrb[1].mxu0 }
 0x3c2   :  { %v368_v23 = vpop.f32.mrb[2].mxu0 }
 0x3c3   :  { %v371_v24 = vmax.f32 %v366_v21, 0.0  ;;  %v643_v25 = vpop.f32.mrb[3].mxu0 }
 0x3c5   :  { %v372_v26 = vpack.c.bf16 %v371_v24, %v371_v24 }
 0x3c7   :  { %661 = vmatmul.mubr.bf16.vlgmr.msra.gmra.mrb[0].mxu1 %v372_v26 }
 0x49a   :  { %v478_v28 = vpop.f32.mrb[0].mxu1 }
 0x49b   :  { %v479_v29 = vadd.f32 %v597_v27, %v478_v28  ;;  %v662_v30 = vpop.f32.mrb[1].mxu1 }
 0x49c   :  { %v481_v31 = vpop.f32.mrb[2].mxu1 }
 0x49d   :  { %484 = vst [vmem:[#allocation12] sm:$0xff] %v479_v29  ;;  %v663_v32 = vpop.f32.mrb[3].mxu1 }
 0x49e   :  { %1016 = shalt.err (!%p1013_p10)
}
 0x49f   :  { %s1017_s6 = scalar_lea.hbm %s1439_s7, 128 }
 0x4a0   :  { %p1018_p11 = scmp.ne.s32.totalorder %s1439_s7, %s1017_s6  ;;  %p1021_p12 = scmp.lt.u32.totalorder %s1017_s6, %s1439_s7 }
 0x4a2   :  { %p1023_p13 = pnand %p1021_p12, %p1018_p11 }
 0x4a4   :  { %1026 = shalt.err (!%p1023_p13)
}
 0x4a5   :  { %494 = dma.vmem_to_hbm [thread:$0]  %s492_s23, 128, %s1439_s7, [#allocation8]  }
 0x4a6   :  { %1129 = dma.done.wait [#allocation8], 128  }
 0x4a7   :  { %1130 = vsyncadd [#allocation8], 4294967168 }
 0x4a8   :  { %498 = vsyncpa [#allocation7], 1 }
 0x4a9   :  { %499 = vsyncpa [#allocation10], 1 }
 0x4aa   :  { %500 = vsyncpa [#allocation8], 1 }

</bundles_post_ra>
